<compile_context>
chip_gen: v7x
topology: tpu7x:2x2x1
jax: 0.10.0
libtpu: 0.0.40
codegen_flags: <defaults>
</compile_context>

<pallas_src>
import functools
import math

import jax
import jax.numpy as jnp
from jax.experimental import pallas as pl
from jax.experimental.pallas import tpu as pltpu


def _round_up(v, m):
    return (v + m - 1) // m * m


def _gcn_kernel(x1_ref, x2_ref, pos1_ref, pos2_ref,
                adj_ref, gcw_ref, gcb_ref,
                w1a_ref, w1b_ref, b1_ref,
                w2_ref, b2_ref, w3_ref, b3_ref,
                w4_ref, b4_ref,
                out_ref, *, mask, tile_b):
    f32 = jnp.float32
    bf16 = jnp.bfloat16

    x1 = x1_ref[...]        # [TB, N] f32
    x2 = x2_ref[...]
    pos1 = pos1_ref[...]
    pos2 = pos2_ref[...]
    adj = adj_ref[...]      # [N, N] bf16

    out1, out2 = x1, x2
    # 5 pairs of GraphConvolution layers: relu(((h @ W) @ adj) + b)
    for layer in range(5):
        w_a = gcw_ref[2 * layer]          # [N, N]  bf16
        w_b = gcw_ref[2 * layer + 1]
        b_a = gcb_ref[2 * layer]          # [1, N]  f32
        b_b = gcb_ref[2 * layer + 1]

        s1 = jnp.dot(out1.astype(bf16), w_a, preferred_element_type=f32)
        s2 = jnp.dot(out2.astype(bf16), w_b, preferred_element_type=f32)
        # Shared adjacency matmul on the row-stacked streams (M = 2*TILE_B).
        s = jnp.concatenate([s1, s2], axis=0).astype(bf16)     # [2TB, N]
        o = jnp.dot(s, adj, preferred_element_type=f32)        # [2TB, N] f32
        out1 = jax.nn.relu(o[:tile_b] + b_a)
        out2 = jax.nn.relu(o[tile_b:] + b_b)
        if mask and layer < 4:
            out1 = out1 * pos1 + x1
            out2 = out2 * pos2 + x2

    # torch.cat((out1, out2), dim=1) followed by the final mask/residual.
    if mask:
        out1 = out1 * pos1 + x1
        out2 = out2 * pos2 + x2

    # fc1 as a split matmul (== concat(out1, out2) @ W1): avoids a lane concat.
    h = (jnp.dot(out1.astype(bf16), w1a_ref[...], preferred_element_type=f32)
         + jnp.dot(out2.astype(bf16), w1b_ref[...], preferred_element_type=f32)
         + b1_ref[...])
    h = jax.nn.relu(h)
    # TODO(synk): nn.Dropout(0.2) modeled as identity (inference mode).
    h = jax.nn.relu(jnp.dot(h.astype(bf16), w2_ref[...], preferred_element_type=f32)
                    + b2_ref[...])
    h = jax.nn.relu(jnp.dot(h.astype(bf16), w3_ref[...], preferred_element_type=f32)
                    + b3_ref[...])
    # fc4 into a lane-dense (padded to 128 lanes) output slab.
    out_ref[...] = (jnp.dot(h.astype(bf16), w4_ref[...], preferred_element_type=f32)
                    + b4_ref[...])


def gcn_forward(x, pos, adj, params, *, n_nodes, mask=True):
    N = n_nodes
    B = x.shape[0]
    (gcw, gcb, w1, b1, w2, b2, w3, b3, w4, b4) = params
    H = w1.shape[1]
    bf16 = jnp.bfloat16

    # v5e-friendly M tile (128); the shared adj matmul sees M = 2*TILE_B (=256),
    # which also feeds the larger v6e/v7x MXU well.
    TILE_B = 128 if B >= 128 else _round_up(max(B, 1), 8)
    B_pad = _round_up(B, TILE_B)
    OUT_PAD = _round_up(2 * N, 128)

    # Wrapper-side layout plumbing (free): stream split, batch pad to the tile,
    # bf16 weight casts, lane-dense (padded) fc4 weight/bias.
    def prep(a):
        a1, a2 = a[:, :N], a[:, N:2 * N]
        if B_pad != B:
            padcfg = ((0, B_pad - B), (0, 0))
            a1, a2 = jnp.pad(a1, padcfg), jnp.pad(a2, padcfg)
        return a1, a2

    x1, x2 = prep(x)
    pos1, pos2 = prep(pos)

    adj_b = adj.astype(bf16)
    gcw_b = gcw.astype(bf16)
    w1a = w1[:N].astype(bf16)
    w1b = w1[N:].astype(bf16)
    w2_b = w2.astype(bf16)
    w3_b = w3.astype(bf16)
    w4_p = jnp.pad(w4, ((0, 0), (0, OUT_PAD - 2 * N))).astype(bf16)
    b4_p = jnp.pad(b4, ((0, 0), (0, OUT_PAD - 2 * N)))

    # Kernel argument order (after the 4 activation tiles):
    weights = (adj_b, gcw_b, gcb, w1a, w1b, b1, w2_b, b2, w3_b, b3, w4_p, b4_p)

    # TODO(synk): for very large n_nodes on v7x (64 MiB VMEM), stream gcw per
    # layer (extra "arbitrary" grid axis or manual double-buffer) instead of
    # keeping all 10 layer weights resident.
    weight_bytes = sum(int(w.size) * w.dtype.itemsize for w in weights)
    act_bytes = TILE_B * (4 * N + 2 * H + OUT_PAD) * 4
    vmem_limit = int(min(max(2 * weight_bytes + 6 * act_bytes + (8 << 20),
                             32 << 20), 100 << 20))

    flops = B_pad * (40 * N * N + 4 * N * H + 4 * H * H + 2 * H * OUT_PAD)
    bytes_accessed = 4 * B_pad * N * 4 + weight_bytes + B_pad * OUT_PAD * 4

    act_spec = pl.BlockSpec((TILE_B, N), lambda i: (i, 0))

    def const_spec(shape):
        zeros = (0,) * len(shape)
        return pl.BlockSpec(tuple(shape), lambda i: zeros)

    kernel = functools.partial(_gcn_kernel, mask=mask, tile_b=TILE_B)
    out_padded = pl.pallas_call(
        kernel,
        out_shape=jax.ShapeDtypeStruct((B_pad, OUT_PAD), jnp.float32),
        grid=(B_pad // TILE_B,),
        in_specs=[act_spec, act_spec, act_spec, act_spec]
                 + [const_spec(w.shape) for w in weights],
        out_specs=pl.BlockSpec((TILE_B, OUT_PAD), lambda i: (i, 0)),
        compiler_params=pltpu.CompilerParams(
            dimension_semantics=("parallel",),
            vmem_limit_bytes=vmem_limit),
        cost_estimate=pl.CostEstimate(flops=int(flops), transcendentals=0,
                                      bytes_accessed=int(bytes_accessed)),
    )(x1, x2, pos1, pos2, *weights)
    return out_padded[:B, :2 * N]


def init_params(key, n_nodes, n_hidden, n_features=2):
    """Deterministic synthetic parameters mirroring the torch module shapes."""
    in_features = n_features * n_nodes      # forward requires n_features == 2
    out_features = in_features
    ks = jax.random.split(key, 14)

    # GraphConvolution: weight [n_nodes, n_nodes] uniform(-stdv, stdv), stdv = 1/sqrt(out)
    stdv = 1.0 / math.sqrt(n_nodes)
    gcw = jax.random.uniform(ks[0], (10, n_nodes, n_nodes), jnp.float32, -stdv, stdv)
    gcb = jax.random.uniform(ks[1], (10, 1, n_nodes), jnp.float32, -stdv, stdv)

    def linear(kw, kb, fan_in, fan_out):
        bound = 1.0 / math.sqrt(fan_in)
        w = jax.random.uniform(kw, (fan_in, fan_out), jnp.float32, -bound, bound)
        b = jax.random.uniform(kb, (1, fan_out), jnp.float32, -bound, bound)
        return w, b

    w1, b1 = linear(ks[2], ks[3], in_features, n_hidden)
    w2, b2 = linear(ks[4], ks[5], n_hidden, n_hidden)
    w3, b3 = linear(ks[6], ks[7], n_hidden, n_hidden)
    w4, b4 = linear(ks[8], ks[9], n_hidden, out_features)
    return (gcw, gcb, w1, b1, w2, b2, w3, b3, w4, b4)


def gcn_reference(x, pos, adj, params, *, n_nodes, mask=True,
                  matmul_dtype=jnp.float32):
    """Pure-JAX mirror of the PyTorch forward.  With matmul_dtype=bfloat16 it
    mirrors the kernel's MXU input precision (float32 accumulation)."""
    (gcw, gcb, w1, b1, w2, b2, w3, b3, w4, b4) = params
    N = n_nodes

    def dot(a, b):
        return jnp.dot(a.astype(matmul_dtype), b.astype(matmul_dtype),
                       preferred_element_type=jnp.float32)

    x1, x2 = x[:, :N], x[:, N:]
    pos1, pos2 = pos[:, :N], pos[:, N:]
    out1, out2 = x1, x2
    for layer in range(5):
        out1 = jax.nn.relu(dot(dot(out1, gcw[2 * layer]), adj) + gcb[2 * layer])
        out2 = jax.nn.relu(dot(dot(out2, gcw[2 * layer + 1]), adj) + gcb[2 * layer + 1])
        if mask and layer < 4:
            out1 = out1 * pos1 + x1
            out2 = out2 * pos2 + x2
    out = jnp.concatenate([out1, out2], axis=1)
    if mask:
        out = out * pos + x
    h = jax.nn.relu(dot(out, w1) + b1)
    h = jax.nn.relu(dot(h, w2) + b2)
    h = jax.nn.relu(dot(h, w3) + b3)
    return dot(h, w4) + b4


if __name__ == "__main__":
    B, N, H = 4, 8, 32          # batch, n_nodes, n_hidden  (n_features = 2)
    key = jax.random.PRNGKey(0)
    kx, kp, ka, kw = jax.random.split(key, 4)

    x = jax.random.normal(kx, (B, 2 * N), jnp.float32)
    pos = jax.random.uniform(kp, (B, 2 * N), jnp.float32)       # mask positions
    adj = jax.random.uniform(ka, (N, N), jnp.float32)
    adj = adj / jnp.sum(adj, axis=0, keepdims=True)             # normalized adjacency

    params = init_params(kw, N, H)

    out = gcn_forward(x, pos, adj, params, n_nodes=N, mask=True)
    out = jax.block_until_ready(out)

    # Reference that mirrors the kernel's bf16 MXU inputs / f32 accumulation.
    ref = gcn_reference(x, pos, adj, params, n_nodes=N, mask=True,
                        matmul_dtype=jnp.bfloat16)
    assert out.shape == (B, 2 * N)
    assert jnp.allclose(out, ref, atol=2e-3, rtol=2e-3), \
        "Pallas output mismatch vs reference"

    print("KERNEL_OK")
</pallas_src>

<mosaic_0001>
module attributes {stable_mosaic.version = 11 : i64} {
  func.func @_gcn_kernel(%arg0: i32, %arg1: memref<8x8xf32, #tpu.memory_space<vmem>>, %arg2: memref<8x8xf32, #tpu.memory_space<vmem>>, %arg3: memref<8x8xf32, #tpu.memory_space<vmem>>, %arg4: memref<8x8xf32, #tpu.memory_space<vmem>>, %arg5: memref<8x8xbf16, #tpu.memory_space<vmem>>, %arg6: memref<10x8x8xbf16, #tpu.memory_space<vmem>>, %arg7: memref<10x1x8xf32, #tpu.memory_space<vmem>>, %arg8: memref<8x32xbf16, #tpu.memory_space<vmem>>, %arg9: memref<8x32xbf16, #tpu.memory_space<vmem>>, %arg10: memref<1x32xf32, #tpu.memory_space<vmem>>, %arg11: memref<32x32xbf16, #tpu.memory_space<vmem>>, %arg12: memref<1x32xf32, #tpu.memory_space<vmem>>, %arg13: memref<32x32xbf16, #tpu.memory_space<vmem>>, %arg14: memref<1x32xf32, #tpu.memory_space<vmem>>, %arg15: memref<32x128xbf16, #tpu.memory_space<vmem>>, %arg16: memref<1x128xf32, #tpu.memory_space<vmem>>, %arg17: memref<8x128xf32, #tpu.memory_space<vmem>>) attributes {dimension_semantics = [#tpu.dimension_semantics<parallel>], iteration_bounds = array<i64: 1>, scalar_prefetch = 0 : i64, scratch_operands = 0 : i64, tpu.core_type = #tpu.core_type<tc>, window_params = [{transform_indices = @transform_0, window_bounds = array<i64: 8, 8>}, {transform_indices = @transform_1, window_bounds = array<i64: 8, 8>}, {transform_indices = @transform_2, window_bounds = array<i64: 8, 8>}, {transform_indices = @transform_3, window_bounds = array<i64: 8, 8>}, {pipeline_mode = #tpu.pipeline_mode<synchronous>, transform_indices = @transform_4, window_bounds = array<i64: 8, 8>}, {pipeline_mode = #tpu.pipeline_mode<synchronous>, transform_indices = @transform_5, window_bounds = array<i64: 10, 8, 8>}, {pipeline_mode = #tpu.pipeline_mode<synchronous>, transform_indices = @transform_6, window_bounds = array<i64: 10, 1, 8>}, {pipeline_mode = #tpu.pipeline_mode<synchronous>, transform_indices = @transform_7, window_bounds = array<i64: 8, 32>}, {pipeline_mode = #tpu.pipeline_mode<synchronous>, transform_indices = @transform_8, window_bounds = array<i64: 8, 32>}, {pipeline_mode = #tpu.pipeline_mode<synchronous>, transform_indices = @transform_9, window_bounds = array<i64: 1, 32>}, {pipeline_mode = #tpu.pipeline_mode<synchronous>, transform_indices = @transform_10, window_bounds = array<i64: 32, 32>}, {pipeline_mode = #tpu.pipeline_mode<synchronous>, transform_indices = @transform_11, window_bounds = array<i64: 1, 32>}, {pipeline_mode = #tpu.pipeline_mode<synchronous>, transform_indices = @transform_12, window_bounds = array<i64: 32, 32>}, {pipeline_mode = #tpu.pipeline_mode<synchronous>, transform_indices = @transform_13, window_bounds = array<i64: 1, 32>}, {pipeline_mode = #tpu.pipeline_mode<synchronous>, transform_indices = @transform_14, window_bounds = array<i64: 32, 128>}, {pipeline_mode = #tpu.pipeline_mode<synchronous>, transform_indices = @transform_15, window_bounds = array<i64: 1, 128>}, {transform_indices = @transform_16, window_bounds = array<i64: 8, 128>}]} {
    %c0 = arith.constant 0 : index
    %c0_0 = arith.constant 0 : index
    %0 = vector.load %arg1[%c0, %c0_0] : memref<8x8xf32, #tpu.memory_space<vmem>>, vector<8x8xf32>
    %c0_1 = arith.constant 0 : index
    %c0_2 = arith.constant 0 : index
    %1 = vector.load %arg2[%c0_1, %c0_2] : memref<8x8xf32, #tpu.memory_space<vmem>>, vector<8x8xf32>
    %c0_3 = arith.constant 0 : index
    %c0_4 = arith.constant 0 : index
    %2 = vector.load %arg3[%c0_3, %c0_4] : memref<8x8xf32, #tpu.memory_space<vmem>>, vector<8x8xf32>
    %c0_5 = arith.constant 0 : index
    %c0_6 = arith.constant 0 : index
    %3 = vector.load %arg4[%c0_5, %c0_6] : memref<8x8xf32, #tpu.memory_space<vmem>>, vector<8x8xf32>
    %c0_7 = arith.constant 0 : index
    %c0_8 = arith.constant 0 : index
    %4 = vector.load %arg5[%c0_7, %c0_8] : memref<8x8xbf16, #tpu.memory_space<vmem>>, vector<8x8xbf16>
    %c0_9 = arith.constant 0 : index
    %c0_10 = arith.constant 0 : index
    %c0_11 = arith.constant 0 : index
    %5 = vector.load %arg6[%c0_9, %c0_10, %c0_11] : memref<10x8x8xbf16, #tpu.memory_space<vmem>>, vector<1x8x8xbf16>
    %6 = vector.shape_cast %5 : vector<1x8x8xbf16> to vector<8x8xbf16>
    %c1 = arith.constant 1 : index
    %c0_12 = arith.constant 0 : index
    %c0_13 = arith.constant 0 : index
    %7 = vector.load %arg6[%c1, %c0_12, %c0_13] : memref<10x8x8xbf16, #tpu.memory_space<vmem>>, vector<1x8x8xbf16>
    %8 = vector.shape_cast %7 : vector<1x8x8xbf16> to vector<8x8xbf16>
    %c0_14 = arith.constant 0 : index
    %c0_15 = arith.constant 0 : index
    %c0_16 = arith.constant 0 : index
    %9 = vector.load %arg7[%c0_14, %c0_15, %c0_16] : memref<10x1x8xf32, #tpu.memory_space<vmem>>, vector<1x1x8xf32>
    %10 = vector.shape_cast %9 : vector<1x1x8xf32> to vector<1x8xf32>
    %c1_17 = arith.constant 1 : index
    %c0_18 = arith.constant 0 : index
    %c0_19 = arith.constant 0 : index
    %11 = vector.load %arg7[%c1_17, %c0_18, %c0_19] : memref<10x1x8xf32, #tpu.memory_space<vmem>>, vector<1x1x8xf32>
    %12 = vector.shape_cast %11 : vector<1x1x8xf32> to vector<1x8xf32>
    %13 = arith.truncf %0 : vector<8x8xf32> to vector<8x8xbf16>
    %cst = arith.constant dense<0.000000e+00> : vector<8x8xf32>
    %14 = tpu.matmul %13, %6, %cst {dimension_numbers = #tpu.dot_dimension_numbers<[1], [0], [0], [1], [0, 0, 1, 1], [], []>} : vector<8x8xbf16>, vector<8x8xbf16>, vector<8x8xf32> -> vector<8x8xf32>
    %15 = arith.truncf %1 : vector<8x8xf32> to vector<8x8xbf16>
    %cst_20 = arith.constant dense<0.000000e+00> : vector<8x8xf32>
    %16 = tpu.matmul %15, %8, %cst_20 {dimension_numbers = #tpu.dot_dimension_numbers<[1], [0], [0], [1], [0, 0, 1, 1], [], []>} : vector<8x8xbf16>, vector<8x8xbf16>, vector<8x8xf32> -> vector<8x8xf32>
    %17 = tpu.concatenate %14, %16 in 0 : vector<8x8xf32>, vector<8x8xf32> -> vector<16x8xf32>
    %18 = arith.truncf %17 : vector<16x8xf32> to vector<16x8xbf16>
    %cst_21 = arith.constant dense<0.000000e+00> : vector<16x8xf32>
    %19 = tpu.matmul %18, %4, %cst_21 {dimension_numbers = #tpu.dot_dimension_numbers<[1], [0], [0], [1], [0, 0, 1, 1], [], []>} : vector<16x8xbf16>, vector<8x8xbf16>, vector<16x8xf32> -> vector<16x8xf32>
    %20 = vector.extract_strided_slice %19 {offsets = [0, 0], sizes = [8, 8], strides = [1, 1]} : vector<16x8xf32> to vector<8x8xf32>
    %21 = vector.broadcast %10 : vector<1x8xf32> to vector<8x8xf32>
    %22 = arith.addf %20, %21 : vector<8x8xf32>
    %cst_22 = arith.constant 0.000000e+00 : f32
    %23 = vector.broadcast %cst_22 : f32 to vector<8x8xf32>
    %24 = arith.maximumf %22, %23 : vector<8x8xf32>
    %25 = vector.extract_strided_slice %19 {offsets = [8, 0], sizes = [8, 8], strides = [1, 1]} : vector<16x8xf32> to vector<8x8xf32>
    %26 = vector.broadcast %12 : vector<1x8xf32> to vector<8x8xf32>
    %27 = arith.addf %25, %26 : vector<8x8xf32>
    %cst_23 = arith.constant 0.000000e+00 : f32
    %28 = vector.broadcast %cst_23 : f32 to vector<8x8xf32>
    %29 = arith.maximumf %27, %28 : vector<8x8xf32>
    %30 = arith.mulf %24, %2 : vector<8x8xf32>
    %31 = arith.addf %30, %0 : vector<8x8xf32>
    %32 = arith.mulf %29, %3 : vector<8x8xf32>
    %33 = arith.addf %32, %1 : vector<8x8xf32>
    %c2 = arith.constant 2 : index
    %c0_24 = arith.constant 0 : index
    %c0_25 = arith.constant 0 : index
    %34 = vector.load %arg6[%c2, %c0_24, %c0_25] : memref<10x8x8xbf16, #tpu.memory_space<vmem>>, vector<1x8x8xbf16>
    %35 = vector.shape_cast %34 : vector<1x8x8xbf16> to vector<8x8xbf16>
    %c3 = arith.constant 3 : index
    %c0_26 = arith.constant 0 : index
    %c0_27 = arith.constant 0 : index
    %36 = vector.load %arg6[%c3, %c0_26, %c0_27] : memref<10x8x8xbf16, #tpu.memory_space<vmem>>, vector<1x8x8xbf16>
    %37 = vector.shape_cast %36 : vector<1x8x8xbf16> to vector<8x8xbf16>
    %c2_28 = arith.constant 2 : index
    %c0_29 = arith.constant 0 : index
    %c0_30 = arith.constant 0 : index
    %38 = vector.load %arg7[%c2_28, %c0_29, %c0_30] : memref<10x1x8xf32, #tpu.memory_space<vmem>>, vector<1x1x8xf32>
    %39 = vector.shape_cast %38 : vector<1x1x8xf32> to vector<1x8xf32>
    %c3_31 = arith.constant 3 : index
    %c0_32 = arith.constant 0 : index
    %c0_33 = arith.constant 0 : index
    %40 = vector.load %arg7[%c3_31, %c0_32, %c0_33] : memref<10x1x8xf32, #tpu.memory_space<vmem>>, vector<1x1x8xf32>
    %41 = vector.shape_cast %40 : vector<1x1x8xf32> to vector<1x8xf32>
    %42 = arith.truncf %31 : vector<8x8xf32> to vector<8x8xbf16>
    %cst_34 = arith.constant dense<0.000000e+00> : vector<8x8xf32>
    %43 = tpu.matmul %42, %35, %cst_34 {dimension_numbers = #tpu.dot_dimension_numbers<[1], [0], [0], [1], [0, 0, 1, 1], [], []>} : vector<8x8xbf16>, vector<8x8xbf16>, vector<8x8xf32> -> vector<8x8xf32>
    %44 = arith.truncf %33 : vector<8x8xf32> to vector<8x8xbf16>
    %cst_35 = arith.constant dense<0.000000e+00> : vector<8x8xf32>
    %45 = tpu.matmul %44, %37, %cst_35 {dimension_numbers = #tpu.dot_dimension_numbers<[1], [0], [0], [1], [0, 0, 1, 1], [], []>} : vector<8x8xbf16>, vector<8x8xbf16>, vector<8x8xf32> -> vector<8x8xf32>
    %46 = tpu.concatenate %43, %45 in 0 : vector<8x8xf32>, vector<8x8xf32> -> vector<16x8xf32>
    %47 = arith.truncf %46 : vector<16x8xf32> to vector<16x8xbf16>
    %cst_36 = arith.constant dense<0.000000e+00> : vector<16x8xf32>
    %48 = tpu.matmul %47, %4, %cst_36 {dimension_numbers = #tpu.dot_dimension_numbers<[1], [0], [0], [1], [0, 0, 1, 1], [], []>} : vector<16x8xbf16>, vector<8x8xbf16>, vector<16x8xf32> -> vector<16x8xf32>
    %49 = vector.extract_strided_slice %48 {offsets = [0, 0], sizes = [8, 8], strides = [1, 1]} : vector<16x8xf32> to vector<8x8xf32>
    %50 = vector.broadcast %39 : vector<1x8xf32> to vector<8x8xf32>
    %51 = arith.addf %49, %50 : vector<8x8xf32>
    %cst_37 = arith.constant 0.000000e+00 : f32
    %52 = vector.broadcast %cst_37 : f32 to vector<8x8xf32>
    %53 = arith.maximumf %51, %52 : vector<8x8xf32>
    %54 = vector.extract_strided_slice %48 {offsets = [8, 0], sizes = [8, 8], strides = [1, 1]} : vector<16x8xf32> to vector<8x8xf32>
    %55 = vector.broadcast %41 : vector<1x8xf32> to vector<8x8xf32>
    %56 = arith.addf %54, %55 : vector<8x8xf32>
    %cst_38 = arith.constant 0.000000e+00 : f32
    %57 = vector.broadcast %cst_38 : f32 to vector<8x8xf32>
    %58 = arith.maximumf %56, %57 : vector<8x8xf32>
    %59 = arith.mulf %53, %2 : vector<8x8xf32>
    %60 = arith.addf %59, %0 : vector<8x8xf32>
    %61 = arith.mulf %58, %3 : vector<8x8xf32>
    %62 = arith.addf %61, %1 : vector<8x8xf32>
    %c4 = arith.constant 4 : index
    %c0_39 = arith.constant 0 : index
    %c0_40 = arith.constant 0 : index
    %63 = vector.load %arg6[%c4, %c0_39, %c0_40] : memref<10x8x8xbf16, #tpu.memory_space<vmem>>, vector<1x8x8xbf16>
    %64 = vector.shape_cast %63 : vector<1x8x8xbf16> to vector<8x8xbf16>
    %c5 = arith.constant 5 : index
    %c0_41 = arith.constant 0 : index
    %c0_42 = arith.constant 0 : index
    %65 = vector.load %arg6[%c5, %c0_41, %c0_42] : memref<10x8x8xbf16, #tpu.memory_space<vmem>>, vector<1x8x8xbf16>
    %66 = vector.shape_cast %65 : vector<1x8x8xbf16> to vector<8x8xbf16>
    %c4_43 = arith.constant 4 : index
    %c0_44 = arith.constant 0 : index
    %c0_45 = arith.constant 0 : index
    %67 = vector.load %arg7[%c4_43, %c0_44, %c0_45] : memref<10x1x8xf32, #tpu.memory_space<vmem>>, vector<1x1x8xf32>
    %68 = vector.shape_cast %67 : vector<1x1x8xf32> to vector<1x8xf32>
    %c5_46 = arith.constant 5 : index
    %c0_47 = arith.constant 0 : index
    %c0_48 = arith.constant 0 : index
    %69 = vector.load %arg7[%c5_46, %c0_47, %c0_48] : memref<10x1x8xf32, #tpu.memory_space<vmem>>, vector<1x1x8xf32>
    %70 = vector.shape_cast %69 : vector<1x1x8xf32> to vector<1x8xf32>
    %71 = arith.truncf %60 : vector<8x8xf32> to vector<8x8xbf16>
    %cst_49 = arith.constant dense<0.000000e+00> : vector<8x8xf32>
    %72 = tpu.matmul %71, %64, %cst_49 {dimension_numbers = #tpu.dot_dimension_numbers<[1], [0], [0], [1], [0, 0, 1, 1], [], []>} : vector<8x8xbf16>, vector<8x8xbf16>, vector<8x8xf32> -> vector<8x8xf32>
    %73 = arith.truncf %62 : vector<8x8xf32> to vector<8x8xbf16>
    %cst_50 = arith.constant dense<0.000000e+00> : vector<8x8xf32>
    %74 = tpu.matmul %73, %66, %cst_50 {dimension_numbers = #tpu.dot_dimension_numbers<[1], [0], [0], [1], [0, 0, 1, 1], [], []>} : vector<8x8xbf16>, vector<8x8xbf16>, vector<8x8xf32> -> vector<8x8xf32>
    %75 = tpu.concatenate %72, %74 in 0 : vector<8x8xf32>, vector<8x8xf32> -> vector<16x8xf32>
    %76 = arith.truncf %75 : vector<16x8xf32> to vector<16x8xbf16>
    %cst_51 = arith.constant dense<0.000000e+00> : vector<16x8xf32>
    %77 = tpu.matmul %76, %4, %cst_51 {dimension_numbers = #tpu.dot_dimension_numbers<[1], [0], [0], [1], [0, 0, 1, 1], [], []>} : vector<16x8xbf16>, vector<8x8xbf16>, vector<16x8xf32> -> vector<16x8xf32>
    %78 = vector.extract_strided_slice %77 {offsets = [0, 0], sizes = [8, 8], strides = [1, 1]} : vector<16x8xf32> to vector<8x8xf32>
    %79 = vector.broadcast %68 : vector<1x8xf32> to vector<8x8xf32>
    %80 = arith.addf %78, %79 : vector<8x8xf32>
    %cst_52 = arith.constant 0.000000e+00 : f32
    %81 = vector.broadcast %cst_52 : f32 to vector<8x8xf32>
    %82 = arith.maximumf %80, %81 : vector<8x8xf32>
    %83 = vector.extract_strided_slice %77 {offsets = [8, 0], sizes = [8, 8], strides = [1, 1]} : vector<16x8xf32> to vector<8x8xf32>
    %84 = vector.broadcast %70 : vector<1x8xf32> to vector<8x8xf32>
    %85 = arith.addf %83, %84 : vector<8x8xf32>
    %cst_53 = arith.constant 0.000000e+00 : f32
    %86 = vector.broadcast %cst_53 : f32 to vector<8x8xf32>
    %87 = arith.maximumf %85, %86 : vector<8x8xf32>
    %88 = arith.mulf %82, %2 : vector<8x8xf32>
    %89 = arith.addf %88, %0 : vector<8x8xf32>
    %90 = arith.mulf %87, %3 : vector<8x8xf32>
    %91 = arith.addf %90, %1 : vector<8x8xf32>
    %c6 = arith.constant 6 : index
    %c0_54 = arith.constant 0 : index
    %c0_55 = arith.constant 0 : index
    %92 = vector.load %arg6[%c6, %c0_54, %c0_55] : memref<10x8x8xbf16, #tpu.memory_space<vmem>>, vector<1x8x8xbf16>
    %93 = vector.shape_cast %92 : vector<1x8x8xbf16> to vector<8x8xbf16>
    %c7 = arith.constant 7 : index
    %c0_56 = arith.constant 0 : index
    %c0_57 = arith.constant 0 : index
    %94 = vector.load %arg6[%c7, %c0_56, %c0_57] : memref<10x8x8xbf16, #tpu.memory_space<vmem>>, vector<1x8x8xbf16>
    %95 = vector.shape_cast %94 : vector<1x8x8xbf16> to vector<8x8xbf16>
    %c6_58 = arith.constant 6 : index
    %c0_59 = arith.constant 0 : index
    %c0_60 = arith.constant 0 : index
    %96 = vector.load %arg7[%c6_58, %c0_59, %c0_60] : memref<10x1x8xf32, #tpu.memory_space<vmem>>, vector<1x1x8xf32>
    %97 = vector.shape_cast %96 : vector<1x1x8xf32> to vector<1x8xf32>
    %c7_61 = arith.constant 7 : index
    %c0_62 = arith.constant 0 : index
    %c0_63 = arith.constant 0 : index
    %98 = vector.load %arg7[%c7_61, %c0_62, %c0_63] : memref<10x1x8xf32, #tpu.memory_space<vmem>>, vector<1x1x8xf32>
    %99 = vector.shape_cast %98 : vector<1x1x8xf32> to vector<1x8xf32>
    %100 = arith.truncf %89 : vector<8x8xf32> to vector<8x8xbf16>
    %cst_64 = arith.constant dense<0.000000e+00> : vector<8x8xf32>
    %101 = tpu.matmul %100, %93, %cst_64 {dimension_numbers = #tpu.dot_dimension_numbers<[1], [0], [0], [1], [0, 0, 1, 1], [], []>} : vector<8x8xbf16>, vector<8x8xbf16>, vector<8x8xf32> -> vector<8x8xf32>
    %102 = arith.truncf %91 : vector<8x8xf32> to vector<8x8xbf16>
    %cst_65 = arith.constant dense<0.000000e+00> : vector<8x8xf32>
    %103 = tpu.matmul %102, %95, %cst_65 {dimension_numbers = #tpu.dot_dimension_numbers<[1], [0], [0], [1], [0, 0, 1, 1], [], []>} : vector<8x8xbf16>, vector<8x8xbf16>, vector<8x8xf32> -> vector<8x8xf32>
    %104 = tpu.concatenate %101, %103 in 0 : vector<8x8xf32>, vector<8x8xf32> -> vector<16x8xf32>
    %105 = arith.truncf %104 : vector<16x8xf32> to vector<16x8xbf16>
    %cst_66 = arith.constant dense<0.000000e+00> : vector<16x8xf32>
    %106 = tpu.matmul %105, %4, %cst_66 {dimension_numbers = #tpu.dot_dimension_numbers<[1], [0], [0], [1], [0, 0, 1, 1], [], []>} : vector<16x8xbf16>, vector<8x8xbf16>, vector<16x8xf32> -> vector<16x8xf32>
    %107 = vector.extract_strided_slice %106 {offsets = [0, 0], sizes = [8, 8], strides = [1, 1]} : vector<16x8xf32> to vector<8x8xf32>
    %108 = vector.broadcast %97 : vector<1x8xf32> to vector<8x8xf32>
    %109 = arith.addf %107, %108 : vector<8x8xf32>
    %cst_67 = arith.constant 0.000000e+00 : f32
    %110 = vector.broadcast %cst_67 : f32 to vector<8x8xf32>
    %111 = arith.maximumf %109, %110 : vector<8x8xf32>
    %112 = vector.extract_strided_slice %106 {offsets = [8, 0], sizes = [8, 8], strides = [1, 1]} : vector<16x8xf32> to vector<8x8xf32>
    %113 = vector.broadcast %99 : vector<1x8xf32> to vector<8x8xf32>
    %114 = arith.addf %112, %113 : vector<8x8xf32>
    %cst_68 = arith.constant 0.000000e+00 : f32
    %115 = vector.broadcast %cst_68 : f32 to vector<8x8xf32>
    %116 = arith.maximumf %114, %115 : vector<8x8xf32>
    %117 = arith.mulf %111, %2 : vector<8x8xf32>
    %118 = arith.addf %117, %0 : vector<8x8xf32>
    %119 = arith.mulf %116, %3 : vector<8x8xf32>
    %120 = arith.addf %119, %1 : vector<8x8xf32>
    %c8 = arith.constant 8 : index
    %c0_69 = arith.constant 0 : index
    %c0_70 = arith.constant 0 : index
    %121 = vector.load %arg6[%c8, %c0_69, %c0_70] : memref<10x8x8xbf16, #tpu.memory_space<vmem>>, vector<1x8x8xbf16>
    %122 = vector.shape_cast %121 : vector<1x8x8xbf16> to vector<8x8xbf16>
    %c9 = arith.constant 9 : index
    %c0_71 = arith.constant 0 : index
    %c0_72 = arith.constant 0 : index
    %123 = vector.load %arg6[%c9, %c0_71, %c0_72] : memref<10x8x8xbf16, #tpu.memory_space<vmem>>, vector<1x8x8xbf16>
    %124 = vector.shape_cast %123 : vector<1x8x8xbf16> to vector<8x8xbf16>
    %c8_73 = arith.constant 8 : index
    %c0_74 = arith.constant 0 : index
    %c0_75 = arith.constant 0 : index
    %125 = vector.load %arg7[%c8_73, %c0_74, %c0_75] : memref<10x1x8xf32, #tpu.memory_space<vmem>>, vector<1x1x8xf32>
    %126 = vector.shape_cast %125 : vector<1x1x8xf32> to vector<1x8xf32>
    %c9_76 = arith.constant 9 : index
    %c0_77 = arith.constant 0 : index
    %c0_78 = arith.constant 0 : index
    %127 = vector.load %arg7[%c9_76, %c0_77, %c0_78] : memref<10x1x8xf32, #tpu.memory_space<vmem>>, vector<1x1x8xf32>
    %128 = vector.shape_cast %127 : vector<1x1x8xf32> to vector<1x8xf32>
    %129 = arith.truncf %118 : vector<8x8xf32> to vector<8x8xbf16>
    %cst_79 = arith.constant dense<0.000000e+00> : vector<8x8xf32>
    %130 = tpu.matmul %129, %122, %cst_79 {dimension_numbers = #tpu.dot_dimension_numbers<[1], [0], [0], [1], [0, 0, 1, 1], [], []>} : vector<8x8xbf16>, vector<8x8xbf16>, vector<8x8xf32> -> vector<8x8xf32>
    %131 = arith.truncf %120 : vector<8x8xf32> to vector<8x8xbf16>
    %cst_80 = arith.constant dense<0.000000e+00> : vector<8x8xf32>
    %132 = tpu.matmul %131, %124, %cst_80 {dimension_numbers = #tpu.dot_dimension_numbers<[1], [0], [0], [1], [0, 0, 1, 1], [], []>} : vector<8x8xbf16>, vector<8x8xbf16>, vector<8x8xf32> -> vector<8x8xf32>
    %133 = tpu.concatenate %130, %132 in 0 : vector<8x8xf32>, vector<8x8xf32> -> vector<16x8xf32>
    %134 = arith.truncf %133 : vector<16x8xf32> to vector<16x8xbf16>
    %cst_81 = arith.constant dense<0.000000e+00> : vector<16x8xf32>
    %135 = tpu.matmul %134, %4, %cst_81 {dimension_numbers = #tpu.dot_dimension_numbers<[1], [0], [0], [1], [0, 0, 1, 1], [], []>} : vector<16x8xbf16>, vector<8x8xbf16>, vector<16x8xf32> -> vector<16x8xf32>
    %136 = vector.extract_strided_slice %135 {offsets = [0, 0], sizes = [8, 8], strides = [1, 1]} : vector<16x8xf32> to vector<8x8xf32>
    %137 = vector.broadcast %126 : vector<1x8xf32> to vector<8x8xf32>
    %138 = arith.addf %136, %137 : vector<8x8xf32>
    %cst_82 = arith.constant 0.000000e+00 : f32
    %139 = vector.broadcast %cst_82 : f32 to vector<8x8xf32>
    %140 = arith.maximumf %138, %139 : vector<8x8xf32>
    %141 = vector.extract_strided_slice %135 {offsets = [8, 0], sizes = [8, 8], strides = [1, 1]} : vector<16x8xf32> to vector<8x8xf32>
    %142 = vector.broadcast %128 : vector<1x8xf32> to vector<8x8xf32>
    %143 = arith.addf %141, %142 : vector<8x8xf32>
    %cst_83 = arith.constant 0.000000e+00 : f32
    %144 = vector.broadcast %cst_83 : f32 to vector<8x8xf32>
    %145 = arith.maximumf %143, %144 : vector<8x8xf32>
    %146 = arith.mulf %140, %2 : vector<8x8xf32>
    %147 = arith.addf %146, %0 : vector<8x8xf32>
    %148 = arith.mulf %145, %3 : vector<8x8xf32>
    %149 = arith.addf %148, %1 : vector<8x8xf32>
    %150 = arith.truncf %147 : vector<8x8xf32> to vector<8x8xbf16>
    %c0_84 = arith.constant 0 : index
    %c0_85 = arith.constant 0 : index
    %151 = vector.load %arg8[%c0_84, %c0_85] : memref<8x32xbf16, #tpu.memory_space<vmem>>, vector<8x32xbf16>
    %cst_86 = arith.constant dense<0.000000e+00> : vector<8x32xf32>
    %152 = tpu.matmul %150, %151, %cst_86 {dimension_numbers = #tpu.dot_dimension_numbers<[1], [0], [0], [1], [0, 0, 1, 1], [], []>} : vector<8x8xbf16>, vector<8x32xbf16>, vector<8x32xf32> -> vector<8x32xf32>
    %153 = arith.truncf %149 : vector<8x8xf32> to vector<8x8xbf16>
    %c0_87 = arith.constant 0 : index
    %c0_88 = arith.constant 0 : index
    %154 = vector.load %arg9[%c0_87, %c0_88] : memref<8x32xbf16, #tpu.memory_space<vmem>>, vector<8x32xbf16>
    %cst_89 = arith.constant dense<0.000000e+00> : vector<8x32xf32>
    %155 = tpu.matmul %153, %154, %cst_89 {dimension_numbers = #tpu.dot_dimension_numbers<[1], [0], [0], [1], [0, 0, 1, 1], [], []>} : vector<8x8xbf16>, vector<8x32xbf16>, vector<8x32xf32> -> vector<8x32xf32>
    %156 = arith.addf %152, %155 : vector<8x32xf32>
    %c0_90 = arith.constant 0 : index
    %c0_91 = arith.constant 0 : index
    %157 = vector.load %arg10[%c0_90, %c0_91] : memref<1x32xf32, #tpu.memory_space<vmem>>, vector<1x32xf32>
    %158 = vector.broadcast %157 : vector<1x32xf32> to vector<8x32xf32>
    %159 = arith.addf %156, %158 : vector<8x32xf32>
    %cst_92 = arith.constant 0.000000e+00 : f32
    %160 = vector.broadcast %cst_92 : f32 to vector<8x32xf32>
    %161 = arith.maximumf %159, %160 : vector<8x32xf32>
    %162 = arith.truncf %161 : vector<8x32xf32> to vector<8x32xbf16>
    %c0_93 = arith.constant 0 : index
    %c0_94 = arith.constant 0 : index
    %163 = vector.load %arg11[%c0_93, %c0_94] : memref<32x32xbf16, #tpu.memory_space<vmem>>, vector<32x32xbf16>
    %cst_95 = arith.constant dense<0.000000e+00> : vector<8x32xf32>
    %164 = tpu.matmul %162, %163, %cst_95 {dimension_numbers = #tpu.dot_dimension_numbers<[1], [0], [0], [1], [0, 0, 1, 1], [], []>} : vector<8x32xbf16>, vector<32x32xbf16>, vector<8x32xf32> -> vector<8x32xf32>
    %c0_96 = arith.constant 0 : index
    %c0_97 = arith.constant 0 : index
    %165 = vector.load %arg12[%c0_96, %c0_97] : memref<1x32xf32, #tpu.memory_space<vmem>>, vector<1x32xf32>
    %166 = vector.broadcast %165 : vector<1x32xf32> to vector<8x32xf32>
    %167 = arith.addf %164, %166 : vector<8x32xf32>
    %cst_98 = arith.constant 0.000000e+00 : f32
    %168 = vector.broadcast %cst_98 : f32 to vector<8x32xf32>
    %169 = arith.maximumf %167, %168 : vector<8x32xf32>
    %170 = arith.truncf %169 : vector<8x32xf32> to vector<8x32xbf16>
    %c0_99 = arith.constant 0 : index
    %c0_100 = arith.constant 0 : index
    %171 = vector.load %arg13[%c0_99, %c0_100] : memref<32x32xbf16, #tpu.memory_space<vmem>>, vector<32x32xbf16>
    %cst_101 = arith.constant dense<0.000000e+00> : vector<8x32xf32>
    %172 = tpu.matmul %170, %171, %cst_101 {dimension_numbers = #tpu.dot_dimension_numbers<[1], [0], [0], [1], [0, 0, 1, 1], [], []>} : vector<8x32xbf16>, vector<32x32xbf16>, vector<8x32xf32> -> vector<8x32xf32>
    %c0_102 = arith.constant 0 : index
    %c0_103 = arith.constant 0 : index
    %173 = vector.load %arg14[%c0_102, %c0_103] : memref<1x32xf32, #tpu.memory_space<vmem>>, vector<1x32xf32>
    %174 = vector.broadcast %173 : vector<1x32xf32> to vector<8x32xf32>
    %175 = arith.addf %172, %174 : vector<8x32xf32>
    %cst_104 = arith.constant 0.000000e+00 : f32
    %176 = vector.broadcast %cst_104 : f32 to vector<8x32xf32>
    %177 = arith.maximumf %175, %176 : vector<8x32xf32>
    %178 = arith.truncf %177 : vector<8x32xf32> to vector<8x32xbf16>
    %c0_105 = arith.constant 0 : index
    %c0_106 = arith.constant 0 : index
    %179 = vector.load %arg15[%c0_105, %c0_106] : memref<32x128xbf16, #tpu.memory_space<vmem>>, vector<32x128xbf16>
    %cst_107 = arith.constant dense<0.000000e+00> : vector<8x128xf32>
    %180 = tpu.matmul %178, %179, %cst_107 {dimension_numbers = #tpu.dot_dimension_numbers<[1], [0], [0], [1], [0, 0, 1, 1], [], []>} : vector<8x32xbf16>, vector<32x128xbf16>, vector<8x128xf32> -> vector<8x128xf32>
    %c0_108 = arith.constant 0 : index
    %c0_109 = arith.constant 0 : index
    %181 = vector.load %arg16[%c0_108, %c0_109] : memref<1x128xf32, #tpu.memory_space<vmem>>, vector<1x128xf32>
    %182 = vector.broadcast %181 : vector<1x128xf32> to vector<8x128xf32>
    %183 = arith.addf %180, %182 : vector<8x128xf32>
    %c0_110 = arith.constant 0 : index
    %c0_111 = arith.constant 0 : index
    %184 = vector.load %arg17[%c0_110, %c0_111] : memref<8x128xf32, #tpu.memory_space<vmem>>, vector<8x128xf32>
    tpu.vector_store %arg17[%c0_110, %c0_111], %183 {strides = array<i32>} : memref<8x128xf32, #tpu.memory_space<vmem>>, vector<8x128xf32>,
    return
  }
  func.func @transform_0(%arg0: i32) -> (i32, i32) {
    %c0_i32 = arith.constant 0 : i32
    %c0_i32_0 = arith.constant 0 : i32
    return %arg0, %c0_i32 : i32, i32
  }
  func.func @transform_1(%arg0: i32) -> (i32, i32) {
    %c0_i32 = arith.constant 0 : i32
    %c0_i32_0 = arith.constant 0 : i32
    return %arg0, %c0_i32 : i32, i32
  }
  func.func @transform_2(%arg0: i32) -> (i32, i32) {
    %c0_i32 = arith.constant 0 : i32
    %c0_i32_0 = arith.constant 0 : i32
    return %arg0, %c0_i32 : i32, i32
  }
  func.func @transform_3(%arg0: i32) -> (i32, i32) {
    %c0_i32 = arith.constant 0 : i32
    %c0_i32_0 = arith.constant 0 : i32
    return %arg0, %c0_i32 : i32, i32
  }
  func.func @transform_4(%arg0: i32) -> (i32, i32) {
    %c0_i32 = arith.constant 0 : i32
    %c0_i32_0 = arith.constant 0 : i32
    %c0_i32_1 = arith.constant 0 : i32
    return %c0_i32, %c0_i32_0 : i32, i32
  }
  func.func @transform_5(%arg0: i32) -> (i32, i32, i32) {
    %c0_i32 = arith.constant 0 : i32
    %c0_i32_0 = arith.constant 0 : i32
    %c0_i32_1 = arith.constant 0 : i32
    %c0_i32_2 = arith.constant 0 : i32
    return %c0_i32, %c0_i32_0, %c0_i32_1 : i32, i32, i32
  }
  func.func @transform_6(%arg0: i32) -> (i32, i32, i32) {
    %c0_i32 = arith.constant 0 : i32
    %c0_i32_0 = arith.constant 0 : i32
    %c0_i32_1 = arith.constant 0 : i32
    %c0_i32_2 = arith.constant 0 : i32
    return %c0_i32, %c0_i32_0, %c0_i32_1 : i32, i32, i32
  }
  func.func @transform_7(%arg0: i32) -> (i32, i32) {
    %c0_i32 = arith.constant 0 : i32
    %c0_i32_0 = arith.constant 0 : i32
    %c0_i32_1 = arith.constant 0 : i32
    return %c0_i32, %c0_i32_0 : i32, i32
  }
  func.func @transform_8(%arg0: i32) -> (i32, i32) {
    %c0_i32 = arith.constant 0 : i32
    %c0_i32_0 = arith.constant 0 : i32
    %c0_i32_1 = arith.constant 0 : i32
    return %c0_i32, %c0_i32_0 : i32, i32
  }
  func.func @transform_9(%arg0: i32) -> (i32, i32) {
    %c0_i32 = arith.constant 0 : i32
    %c0_i32_0 = arith.constant 0 : i32
    %c0_i32_1 = arith.constant 0 : i32
    return %c0_i32, %c0_i32_0 : i32, i32
  }
  func.func @transform_10(%arg0: i32) -> (i32, i32) {
    %c0_i32 = arith.constant 0 : i32
    %c0_i32_0 = arith.constant 0 : i32
    %c0_i32_1 = arith.constant 0 : i32
    return %c0_i32, %c0_i32_0 : i32, i32
  }
  func.func @transform_11(%arg0: i32) -> (i32, i32) {
    %c0_i32 = arith.constant 0 : i32
    %c0_i32_0 = arith.constant 0 : i32
    %c0_i32_1 = arith.constant 0 : i32
    return %c0_i32, %c0_i32_0 : i32, i32
  }
  func.func @transform_12(%arg0: i32) -> (i32, i32) {
    %c0_i32 = arith.constant 0 : i32
    %c0_i32_0 = arith.constant 0 : i32
    %c0_i32_1 = arith.constant 0 : i32
    return %c0_i32, %c0_i32_0 : i32, i32
  }
  func.func @transform_13(%arg0: i32) -> (i32, i32) {
    %c0_i32 = arith.constant 0 : i32
    %c0_i32_0 = arith.constant 0 : i32
    %c0_i32_1 = arith.constant 0 : i32
    return %c0_i32, %c0_i32_0 : i32, i32
  }
  func.func @transform_14(%arg0: i32) -> (i32, i32) {
    %c0_i32 = arith.constant 0 : i32
    %c0_i32_0 = arith.constant 0 : i32
    %c0_i32_1 = arith.constant 0 : i32
    return %c0_i32, %c0_i32_0 : i32, i32
  }
  func.func @transform_15(%arg0: i32) -> (i32, i32) {
    %c0_i32 = arith.constant 0 : i32
    %c0_i32_0 = arith.constant 0 : i32
    %c0_i32_1 = arith.constant 0 : i32
    return %c0_i32, %c0_i32_0 : i32, i32
  }
  func.func @transform_16(%arg0: i32) -> (i32, i32) {
    %c0_i32 = arith.constant 0 : i32
    %c0_i32_0 = arith.constant 0 : i32
    return %arg0, %c0_i32 : i32, i32
  }
}

</mosaic_0001>

<bundles_post_ra>
// kernel: tpu_custom_call.1
= control target key start
LH: loop header
LB: loop body
LE: loop exit
PB: predicated region body
PF: predicated region fallthrough
CT: control target
= control target key end

     0   :  { %s1924_s0 = inlined_call_operand.vmem [shape: f32[8,8], index: 0, kind: input, shape index: {}]   ;;  %s1925_s1 = inlined_call_operand.vmem [shape: f32[8,8], index: 1, kind: input, shape index: {}]   ;;  %s1926_s2 = inlined_call_operand.vmem [shape: f32[8,8], index: 2, kind: input, shape index: {}]   ;;  %s1927_s3 = inlined_call_operand.hbm [shape: f32[8,8], index: 3, kind: input, shape index: {}]   ;;  %s1928_s4 = inlined_call_operand.hbm [shape: bf16[8,8], index: 4, kind: input, shape index: {}]   ;;  %s1929_s5 = inlined_call_operand.vmem [shape: bf16[10,8,8], index: 5, kind: input, shape index: {}]   ;;  %s1930_s6 = inlined_call_operand.vmem [shape: f32[10,1,8], index: 6, kind: input, shape index: {}]   ;;  %s1931_s7 = inlined_call_operand.vmem [shape: bf16[8,32], index: 7, kind: input, shape index: {}]   ;;  %s1932_s8 = inlined_call_operand.vmem [shape: bf16[8,32], index: 8, kind: input, shape index: {}]   ;;  %s1933_s9 = inlined_call_operand.vmem [shape: f32[1,32], index: 9, kind: input, shape index: {}]   ;;  %s1934_s10 = inlined_call_operand.vmem [shape: bf16[32,32], index: 10, kind: input, shape index: {}]   ;;  %s1935_s11 = inlined_call_operand.vmem [shape: f32[1,32], index: 11, kind: input, shape index: {}]   ;;  %s1936_s12 = inlined_call_operand.vmem [shape: bf16[32,32], index: 12, kind: input, shape index: {}]   ;;  %s1937_s13 = inlined_call_operand.vmem [shape: f32[1,32], index: 13, kind: input, shape index: {}]   ;;  %s1938_s14 = inlined_call_operand.vmem [shape: bf16[32,128], index: 14, kind: input, shape index: {}]   ;;  %s1939_s15 = inlined_call_operand.vmem [shape: f32[1,128], index: 15, kind: input, shape index: {}]   ;;  %s1940_s16 = inlined_call_operand.hbm [shape: f32[8,128], index: 16, kind: output, shape index: {}]  }
   0x1   :  { %1941 = sst [smem:[#allocation11_spill]] %s1924_s0 }
   0x2   :  { %21 = vsyncpa [#allocation3], 0 }
   0x3   :  { %22 = vsyncpa [#allocation6], 0 }
   0x4   :  { %23 = vsyncpa [#allocation4], 0  ;;  %s1558_s21 = smov [#allocation2]   ;;  %s1559_s23 = smov [#allocation5]  }
   0x5   :  { %s36_s22 = sshll.u32 %s1558_s21, 4  ;;  %s46_s24 = sshll.u32 %s1559_s23, 4  ;;  %s37_s22 = int_to_ptr.vmem [resolvable:$true] %s36_s22  ;;  %s47_s24 = int_to_ptr.vmem [resolvable:$true] %s46_s24 }
   0x6   :  { %s1486_s27 = scalar_lea.hbm %s1927_s3, 128 }
   0x7   :  { %p1487_p0 = scmp.ne.s32.totalorder %s1927_s3, %s1486_s27  ;;  %p1490_p1 = scmp.lt.u32.totalorder %s1486_s27, %s1927_s3 }
   0x9   :  { %p1492_p2 = pnand %p1490_p1, %p1487_p0 }
   0xb   :  { %1495 = shalt.err (!%p1492_p2)
}
   0xc   :  { %s1496_s17 = scalar_lea.vmem %s37_s22, 128  ;;  %p1501_p4 = scmp.lt.s32.totalorder %s37_s22, %s37_s22 }
   0xd   :  { %p1497_p3 = scmp.ne.s32.totalorder %s37_s22, %s1496_s17  ;;  %p1502_p5 = scmp.lt.s32.totalorder %s1496_s17, %s1496_s17 }
   0xf   :  { %p1503_p6 = por %p1502_p5, %p1501_p4 }
  0x11   :  { %p1504_p7 = pnand %p1503_p6, %p1497_p3 }
  0x13   :  { %1507 = shalt.err (!%p1504_p7)
}
  0x14   :  { %39 = dma.hbm_to_vmem [thread:$0]  %s1927_s3, 128, %s37_s22, [#allocation3]  }
  0x15   :  { %s1508_s23 = scalar_lea.hbm %s1928_s4, 64 }
  0x16   :  { %p1509_p8 = scmp.ne.s32.totalorder %s1928_s4, %s1508_s23  ;;  %p1512_p9 = scmp.lt.u32.totalorder %s1508_s23, %s1928_s4 }
  0x18   :  { %p1514_p10 = pnand %p1512_p9, %p1509_p8 }
  0x1a   :  { %1517 = shalt.err (!%p1514_p10)
}
  0x1b   :  { %s1518_s29 = scalar_lea.vmem %s47_s24, 64  ;;  %p1523_p12 = scmp.lt.s32.totalorder %s47_s24, %s47_s24 }
  0x1c   :  { %p1519_p11 = scmp.ne.s32.totalorder %s47_s24, %s1518_s29  ;;  %p1524_p13 = scmp.lt.s32.totalorder %s1518_s29, %s1518_s29 }
  0x1e   :  { %p1525_p0 = por %p1524_p13, %p1523_p12 }
  0x20   :  { %p1526_p1 = pnand %p1525_p0, %p1519_p11 }
  0x22   :  { %1529 = shalt.err (!%p1526_p1)
}
  0x23   :  { %49 = dma.hbm_to_vmem [thread:$0]  %s1928_s4, 64, %s47_s24, [#allocation6]  }
  0x24   :  { %1552 = dma.done.wait [#allocation3], 128  }
  0x25   :  { %1553 = vsyncadd [#allocation3], 4294967168 }
  0x26   :  { %1554 = dma.done.wait [#allocation6], 64  }
  0x27   :  { %1555 = vsyncadd [#allocation6], 4294967232  ;;  %v1560_v0 = vmov 0.0   ;;  %vm1561_vm0 = vmmov 0   ;;  %vm95_vm1 = vcmask 1043456   ;;  %s1942_s19 = sld [smem:[#allocation11_spill]] }
  0x28   :  { %1349 = vmatprep.subr.bf16.mxu0 %v1560_v0  ;;  %1355 = vmatprep.subr.bf16.mxu1 %v1560_v0  ;;  %v84_v1 = vld [vmem:[%s1929_s5] sm:$0xf]  ;;  %v1248_v2 = vld [vmem:[%s1929_s5 + $0x4] sm:$0xf]  ;;  %v83_v8 = vld [vmem:[#allocation5] sm:$0xf] }
  0x29   :  { %1351 = vmatprep.mubr.msk.bf16.mxu0 %vm1561_vm0, %v1560_v0  ;;  %1357 = vmatprep.mubr.msk.bf16.mxu1 %vm1561_vm0, %v1560_v0  ;;  %v97_v4 = vsel %vm95_vm1, %v84_v1, 0  ;;  %v144_v5 = vsel %vm95_vm1, %v1248_v2, 0  ;;  %v1696_v7 = vld [vmem:[%s1925_s1] sm:$0xff]  ;;  %vm91_vm2 = vcmask 64512   ;;  %v1701_v10 = vsel %vm95_vm1, %v83_v8, 0  ;;  %s1562_s18 = smov [#allocation7]  }
  0x2a   :  { %1350 = vmatpush3.bf16.msra.mxu0 %v97_v4  ;;  %1356 = vmatpush3.bf16.msra.mxu1 %v144_v5  ;;  %v139_v9 = vpack.c.bf16 %v1696_v7, %v1696_v7  ;;  %v1255_v20 = vld [vmem:[%s1929_s5 + $0x8] sm:$0xf]  ;;  %v1256_v22 = vld [vmem:[%s1929_s5 + $0xc] sm:$0xf]  ;;  %v1253_v24 = vld [vmem:[%s1930_s6] ss:$0 sm:$0xff] }
  0x2b   :  { %1361 = vmatprep.subr.bf16.mxu0 %v1560_v0  ;;  %1367 = vmatprep.subr.bf16.mxu1 %v1560_v0  ;;  %v267_v21 = vsel %vm95_vm1, %v1255_v20, 0  ;;  %v314_v23 = vsel %vm95_vm1, %v1256_v22, 0  ;;  %v1254_v26 = vld [vmem:[%s1930_s6 + $0x1] ss:$0 sm:$0xff]  ;;  %v1264_v51 = vld [vmem:[%s1929_s5 + $0x10] sm:$0xf] }
  0x2c   :  { %v1735_v29 = vld [vmem:[%s1926_s2] sm:$0xff]  ;;  %v434_v52 = vsel %vm95_vm1, %v1264_v51, 0  ;;  %v1265_v53 = vld [vmem:[%s1929_s5 + $0x14] sm:$0xf]  ;;  %v1273_v20 = vld [vmem:[%s1929_s5 + $0x18] sm:$0xf] }
  0x2d   :  { %v1687_v3 = vld [vmem:[%s1942_s19] sm:$0xff]  ;;  %1358 = vmatmul.mubr.msk.bf16.vlgmr.msra.gmra.mrb[0].mxu1 %vm91_vm2, %v139_v9  ;;  %v481_v54 = vsel %vm95_vm1, %v1265_v53, 0  ;;  %v1274_v22 = vld [vmem:[%s1929_s5 + $0x1c] sm:$0xf]  ;;  %vm1051_vm3 = vcmask 261120  }
  0x2e   :  { %v90_v6 = vpack.c.bf16 %v1687_v3, %v1687_v3  ;;  %1369 = vmatprep.mubr.msk.bf16.mxu1 %vm1561_vm0, %v1560_v0  ;;  %1368 = vmatpush3.bf16.msra.mxu1 %v267_v21  ;;  %v1737_v34 = vld [vmem:[#allocation2] sm:$0xff]  ;;  %v601_v21 = vsel %vm95_vm1, %v1273_v20, 0 }
  0x2f   :  { %1379 = vmatprep.subr.bf16.mxu1 %v1560_v0  ;;  %v1262_v55 = vld [vmem:[%s1930_s6 + $0x2] ss:$0 sm:$0xff]  ;;  %v1263_v57 = vld [vmem:[%s1930_s6 + $0x3] ss:$0 sm:$0xff]  ;;  %v1283_v53 = vld [vmem:[%s1929_s5 + $0x24] sm:$0xf] }
  0x30   :  { %1352 = vmatmul.mubr.msk.bf16.vlgmr.msra.gmra.mrb[0].mxu0 %vm91_vm2, %v90_v6  ;;  %v1282_v51 = vld [vmem:[%s1929_s5 + $0x20] sm:$0xf] }
  0x31   :  { %1362 = vmatpush3.bf16.msra.mxu0 %v1701_v10  ;;  %1363 = vmatprep.mubr.msk.bf16.mxu0 %vm1561_vm0, %v1560_v0 }
  0x32   :  { %1373 = vmatprep.subr.bf16.mxu0 %v1560_v0 }
 0x100   :  { %v180_v12 = vpop.f32.mrb[0].mxu1 }
 0x101   :  { %v1359_v15 = vpop.f32.mrb[1].mxu1 }
 0x102   :  { %v183_v17 = vpop.f32.mrb[2].mxu1 }
 0x103   :  { %v133_v11 = vpop.f32.mrb[0].mxu0  ;;  %v1360_v19 = vpop.f32.mrb[3].mxu1 }
 0x104   :  { %v186_v13 = vpack.c.bf16 %v180_v12, %v133_v11  ;;  %v1353_v14 = vpop.f32.mrb[1].mxu0 }
 0x105   :  { %v136_v16 = vpop.f32.mrb[2].mxu0 }
 0x106   :  { %v1354_v18 = vpop.f32.mrb[3].mxu0  ;;  %1364 = vmatmul.mubr.msk.bf16.vlgmr.msra.gmra.mrb[4].mxu0 %vm91_vm2, %v186_v13 }
 0x107   :  { %1375 = vmatprep.mubr.msk.bf16.mxu0 %vm1561_vm0, %v1560_v0  ;;  %1374 = vmatpush3.bf16.msra.mxu0 %v314_v23  ;;  %v648_v23 = vsel %vm95_vm1, %v1274_v22, 0 }
 0x108   :  { %1385 = vmatprep.subr.bf16.mxu0 %v1560_v0 }
 0x1d9   :  { %v227_v25 = vpop.f32.mrb[4].mxu0 }
 0x1da   :  { %v240_v27 = vadd.f32 %v1253_v24, %v227_v25  ;;  %v1365_v28 = vpop.f32.mrb[5].mxu0  ;;  %v1271_v24 = vld [vmem:[%s1930_s6 + $0x4] ss:$0 sm:$0xff] }
 0x1db   :  { %v230_v30 = vpop.f32.mrb[6].mxu0 }
 0x1dc   :  { %v241_v31 = vmax.f32 %v240_v27, 0.0  ;;  %v248_v32 = vadd.f32 %v1254_v26, %v230_v30  ;;  %v1366_v33 = vpop.f32.mrb[7].mxu0  ;;  %v1272_v26 = vld [vmem:[%s1930_s6 + $0x5] ss:$0 sm:$0xff] }
 0x1de   :  { %v250_v35 = vmul.f32 %v241_v31, %v1735_v29  ;;  %v249_v36 = vmax.f32 %v248_v32, 0.0 }
 0x1e0   :  { %v251_v37 = vadd.f32 %v250_v35, %v1687_v3  ;;  %v252_v38 = vmul.f32 %v249_v36, %v1737_v34 }
 0x1e2   :  { %v262_v39 = vpack.c.bf16 %v251_v37, %v251_v37  ;;  %v253_v40 = vadd.f32 %v252_v38, %v1696_v7 }
 0x1e4   :  { %v309_v41 = vpack.c.bf16 %v253_v40, %v253_v40  ;;  %1370 = vmatmul.mubr.msk.bf16.vlgmr.msra.gmra.mrb[4].mxu1 %vm91_vm2, %v262_v39 }
 0x1e5   :  { %1380 = vmatpush3.bf16.msra.mxu1 %v1701_v10  ;;  %1381 = vmatprep.mubr.msk.bf16.mxu1 %vm1561_vm0, %v1560_v0 }
 0x1e6   :  { %1376 = vmatmul.mubr.msk.bf16.vlgmr.msra.gmra.mrb[8].mxu0 %vm91_vm2, %v309_v41  ;;  %1391 = vmatprep.subr.bf16.mxu1 %v1560_v0 }
 0x1e7   :  { %1387 = vmatprep.mubr.msk.bf16.mxu0 %vm1561_vm0, %v1560_v0  ;;  %1386 = vmatpush3.bf16.msra.mxu0 %v434_v52  ;;  %v768_v52 = vsel %vm95_vm1, %v1282_v51, 0 }
 0x1e8   :  { %1397 = vmatprep.subr.bf16.mxu0 %v1560_v0 }
 0x2b7   :  { %v303_v42 = vpop.f32.mrb[4].mxu1 }
 0x2b8   :  { %v1371_v43 = vpop.f32.mrb[5].mxu1 }
 0x2b9   :  { %v306_v44 = vpop.f32.mrb[6].mxu1  ;;  %v350_v45 = vpop.f32.mrb[8].mxu0 }
 0x2ba   :  { %v356_v46 = vpack.c.bf16 %v350_v45, %v303_v42  ;;  %v1372_v47 = vpop.f32.mrb[7].mxu1  ;;  %v1377_v48 = vpop.f32.mrb[9].mxu0 }
 0x2bb   :  { %v353_v49 = vpop.f32.mrb[10].mxu0 }
 0x2bc   :  { %v1378_v50 = vpop.f32.mrb[11].mxu0  ;;  %1382 = vmatmul.mubr.msk.bf16.vlgmr.msra.gmra.mrb[8].mxu1 %vm91_vm2, %v356_v46 }
 0x2bd   :  { %1393 = vmatprep.mubr.msk.bf16.mxu1 %vm1561_vm0, %v1560_v0  ;;  %1392 = vmatpush3.bf16.msra.mxu1 %v481_v54  ;;  %v815_v54 = vsel %vm95_vm1, %v1283_v53, 0  ;;  %v1483_v53 = vld [vmem:[%s1936_s12 + $0x8] sm:$0xff]  }
 0x2be   :  { %1403 = vmatprep.subr.bf16.mxu1 %v1560_v0 }
 0x38f   :  { %v394_v56 = vpop.f32.mrb[8].mxu1 }
 0x390   :  { %v407_v58 = vadd.f32 %v1262_v55, %v394_v56  ;;  %v1383_v59 = vpop.f32.mrb[9].mxu1  ;;  %v1280_v55 = vld [vmem:[%s1930_s6 + $0x6] ss:$0 sm:$0xff] }
 0x391   :  { %v397_v60 = vpop.f32.mrb[10].mxu1 }
 0x392   :  { %v408_v61 = vmax.f32 %v407_v58, 0.0  ;;  %v415_v62 = vadd.f32 %v1263_v57, %v397_v60  ;;  %v1384_v63 = vpop.f32.mrb[11].mxu1  ;;  %v1281_v57 = vld [vmem:[%s1930_s6 + $0x7] ss:$0 sm:$0xff] }
 0x394   :  { %v417_v1 = vmul.f32 %v408_v61, %v1735_v29  ;;  %v416_v2 = vmax.f32 %v415_v62, 0.0 }
 0x396   :  { %v418_v4 = vadd.f32 %v417_v1, %v1687_v3  ;;  %v419_v5 = vmul.f32 %v416_v2, %v1737_v34 }
 0x398   :  { %v429_v6 = vpack.c.bf16 %v418_v4, %v418_v4  ;;  %v420_v8 = vadd.f32 %v419_v5, %v1696_v7 }
 0x39a   :  { %v476_v9 = vpack.c.bf16 %v420_v8, %v420_v8  ;;  %1388 = vmatmul.mubr.msk.bf16.vlgmr.msra.gmra.mrb[12].mxu0 %vm91_vm2, %v429_v6 }
 0x39b   :  { %1398 = vmatpush3.bf16.msra.mxu0 %v1701_v10  ;;  %1399 = vmatprep.mubr.msk.bf16.mxu0 %vm1561_vm0, %v1560_v0 }
 0x39c   :  { %1394 = vmatmul.mubr.msk.bf16.vlgmr.msra.gmra.mrb[12].mxu1 %vm91_vm2, %v476_v9  ;;  %1409 = vmatprep.subr.bf16.mxu0 %v1560_v0 }
 0x39d   :  { %1405 = vmatprep.mubr.msk.bf16.mxu1 %vm1561_vm0, %v1560_v0  ;;  %1404 = vmatpush3.bf16.msra.mxu1 %v601_v21  ;;  %v925_v21 = vld [vmem:[%s1932_s8] sm:$0xf] }
 0x39e   :  { %1415 = vmatprep.subr.bf16.mxu1 %v1560_v0  ;;  %v930_v22 = vsel %vm95_vm1, %v925_v21, 0 }
 0x46d   :  { %v470_v11 = vpop.f32.mrb[12].mxu0 }
 0x46e   :  { %v1389_v12 = vpop.f32.mrb[13].mxu0 }
 0x46f   :  { %v473_v13 = vpop.f32.mrb[14].mxu0  ;;  %v517_v14 = vpop.f32.mrb[12].mxu1 }
 0x470   :  { %v523_v15 = vpack.c.bf16 %v517_v14, %v470_v11  ;;  %v1390_v16 = vpop.f32.mrb[15].mxu0  ;;  %v1395_v17 = vpop.f32.mrb[13].mxu1 }
 0x471   :  { %v520_v18 = vpop.f32.mrb[14].mxu1 }
 0x472   :  { %v1396_v19 = vpop.f32.mrb[15].mxu1  ;;  %1400 = vmatmul.mubr.msk.bf16.vlgmr.msra.gmra.mrb[16].mxu0 %vm91_vm2, %v523_v15 }
 0x473   :  { %1411 = vmatprep.mubr.msk.bf16.mxu0 %vm1561_vm0, %v1560_v0  ;;  %1410 = vmatpush3.bf16.msra.mxu0 %v648_v23  ;;  %v1289_v23 = vld [vmem:[%s1930_s6 + $0x8] ss:$0 sm:$0xff] }
 0x474   :  { %1421 = vmatprep.subr.bf16.mxu0 %v1560_v0 }
 0x545   :  { %v561_v25 = vpop.f32.mrb[16].mxu0 }
 0x546   :  { %v574_v27 = vadd.f32 %v1271_v24, %v561_v25  ;;  %v1401_v28 = vpop.f32.mrb[17].mxu0  ;;  %v1290_v25 = vld [vmem:[%s1930_s6 + $0x9] ss:$0 sm:$0xff] }
 0x547   :  { %v564_v30 = vpop.f32.mrb[18].mxu0 }
 0x548   :  { %v575_v31 = vmax.f32 %v574_v27, 0.0  ;;  %v582_v32 = vadd.f32 %v1272_v26, %v564_v30  ;;  %v1402_v33 = vpop.f32.mrb[19].mxu0 }
 0x54a   :  { %v584_v35 = vmul.f32 %v575_v31, %v1735_v29  ;;  %v583_v36 = vmax.f32 %v582_v32, 0.0 }
 0x54c   :  { %v585_v37 = vadd.f32 %v584_v35, %v1687_v3  ;;  %v586_v38 = vmul.f32 %v583_v36, %v1737_v34 }
 0x54e   :  { %v596_v39 = vpack.c.bf16 %v585_v37, %v585_v37  ;;  %v587_v40 = vadd.f32 %v586_v38, %v1696_v7 }
 0x550   :  { %v643_v41 = vpack.c.bf16 %v587_v40, %v587_v40  ;;  %1406 = vmatmul.mubr.msk.bf16.vlgmr.msra.gmra.mrb[16].mxu1 %vm91_vm2, %v596_v39 }
 0x551   :  { %1416 = vmatpush3.bf16.msra.mxu1 %v1701_v10  ;;  %1417 = vmatprep.mubr.msk.bf16.mxu1 %vm1561_vm0, %v1560_v0 }
 0x552   :  { %1412 = vmatmul.mubr.msk.bf16.vlgmr.msra.gmra.mrb[20].mxu0 %vm91_vm2, %v643_v41  ;;  %1427 = vmatprep.subr.bf16.mxu1 %v1560_v0 }
 0x553   :  { %1423 = vmatprep.mubr.msk.bf16.mxu0 %vm1561_vm0, %v1560_v0  ;;  %1422 = vmatpush3.bf16.msra.mxu0 %v768_v52 }
 0x554   :  { %1433 = vmatprep.subr.bf16.mxu0 %v1560_v0 }
 0x623   :  { %v637_v42 = vpop.f32.mrb[16].mxu1 }
 0x624   :  { %v1407_v43 = vpop.f32.mrb[17].mxu1 }
 0x625   :  { %v640_v44 = vpop.f32.mrb[18].mxu1  ;;  %v684_v45 = vpop.f32.mrb[20].mxu0  ;;  %v1293_v43 = vld [vmem:[%s1933_s9] ss:$0 sm:$0xff] }
 0x626   :  { %v690_v46 = vpack.c.bf16 %v684_v45, %v637_v42  ;;  %v1408_v47 = vpop.f32.mrb[19].mxu1  ;;  %v1413_v48 = vpop.f32.mrb[21].mxu0 }
 0x627   :  { %v687_v49 = vpop.f32.mrb[22].mxu0 }
 0x628   :  { %v1414_v50 = vpop.f32.mrb[23].mxu0  ;;  %1418 = vmatmul.mubr.msk.bf16.vlgmr.msra.gmra.mrb[20].mxu1 %vm91_vm2, %v690_v46 }
 0x629   :  { %1429 = vmatprep.mubr.msk.bf16.mxu1 %vm1561_vm0, %v1560_v0  ;;  %1428 = vmatpush3.bf16.msra.mxu1 %v815_v54  ;;  %v1484_v54 = vld [vmem:[%s1938_s14] sm:$0xff]  }
 0x62a   :  { %1439 = vmatprep.subr.bf16.mxu1 %v1560_v0 }
 0x6fb   :  { %v728_v56 = vpop.f32.mrb[20].mxu1 }
 0x6fc   :  { %v741_v58 = vadd.f32 %v1280_v55, %v728_v56  ;;  %v1419_v59 = vpop.f32.mrb[21].mxu1  ;;  %v1294_v55 = vld [vmem:[%s1935_s11] ss:$0 sm:$0xff] }
 0x6fd   :  { %v731_v60 = vpop.f32.mrb[22].mxu1 }
 0x6fe   :  { %v742_v61 = vmax.f32 %v741_v58, 0.0  ;;  %v749_v62 = vadd.f32 %v1281_v57, %v731_v60  ;;  %v1420_v63 = vpop.f32.mrb[23].mxu1 }
 0x6ff   :  { %v1485_v63 = vld [vmem:[%s1938_s14 + $0x8] sm:$0xff]   ;;  %s1238_s14 = sshll.u32 %s1562_s18, 4  ;;  %s1239_s14 = int_to_ptr.vmem [resolvable:$true] %s1238_s14 }
 0x700   :  { %v751_v1 = vmul.f32 %v742_v61, %v1735_v29  ;;  %v750_v2 = vmax.f32 %v749_v62, 0.0  ;;  %p1535_p3 = scmp.lt.s32.totalorder %s1239_s14, %s1239_s14 }
 0x702   :  { %v752_v4 = vadd.f32 %v751_v1, %v1687_v3  ;;  %v753_v5 = vmul.f32 %v750_v2, %v1737_v34 }
 0x704   :  { %v763_v6 = vpack.c.bf16 %v752_v4, %v752_v4  ;;  %v754_v8 = vadd.f32 %v753_v5, %v1696_v7 }
 0x706   :  { %v810_v9 = vpack.c.bf16 %v754_v8, %v754_v8  ;;  %1424 = vmatmul.mubr.msk.bf16.vlgmr.msra.gmra.mrb[24].mxu0 %vm91_vm2, %v763_v6 }
 0x707   :  { %1434 = vmatpush3.bf16.msra.mxu0 %v1701_v10  ;;  %1435 = vmatprep.mubr.msk.bf16.mxu0 %vm1561_vm0, %v1560_v0  ;;  %v923_v10 = vld [vmem:[%s1931_s7] sm:$0xf] }
 0x708   :  { %1430 = vmatmul.mubr.msk.bf16.vlgmr.msra.gmra.mrb[24].mxu1 %vm91_vm2, %v810_v9  ;;  %1445 = vmatprep.subr.bf16.mxu0 %v1560_v0  ;;  %v976_v20 = vsel %vm95_vm1, %v923_v10, 0 }
 0x709   :  { %1441 = vmatprep.mubr.msk.bf16.mxu1 %vm1561_vm0, %v1560_v0  ;;  %1440 = vmatpush3.bf16.msra.mxu1 %v930_v22 }
 0x70a   :  { %1451 = vmatprep.subr.bf16.mxu1 %v1560_v0 }
 0x7d9   :  { %v804_v11 = vpop.f32.mrb[24].mxu0 }
 0x7da   :  { %v1425_v12 = vpop.f32.mrb[25].mxu0 }
 0x7db   :  { %v807_v13 = vpop.f32.mrb[26].mxu0  ;;  %v851_v14 = vpop.f32.mrb[24].mxu1 }
 0x7dc   :  { %v857_v15 = vpack.c.bf16 %v851_v14, %v804_v11  ;;  %v1426_v16 = vpop.f32.mrb[27].mxu0  ;;  %v1431_v17 = vpop.f32.mrb[25].mxu1  ;;  %v1302_v11 = vld [vmem:[%s1939_s15] ss:$0 sm:$0xff] }
 0x7dd   :  { %v854_v18 = vpop.f32.mrb[26].mxu1 }
 0x7de   :  { %v1432_v19 = vpop.f32.mrb[27].mxu1  ;;  %1436 = vmatmul.mubr.msk.bf16.vlgmr.msra.gmra.mrb[28].mxu0 %vm91_vm2, %v857_v15 }
 0x7df   :  { %1447 = vmatprep.mubr.msk.bf16.mxu0 %vm1561_vm0, %v1560_v0  ;;  %1446 = vmatpush3.bf16.msra.mxu0 %v976_v20 }
 0x7e0   :  { %1459 = vmatprep.subr.bf16.mxu0 %v1560_v0 }
 0x8b1   :  { %v895_v24 = vpop.f32.mrb[28].mxu0 }
 0x8b2   :  { %v908_v26 = vadd.f32 %v1289_v23, %v895_v24  ;;  %v1437_v27 = vpop.f32.mrb[29].mxu0 }
 0x8b3   :  { %v898_v28 = vpop.f32.mrb[30].mxu0 }
 0x8b4   :  { %v909_v30 = vmax.f32 %v908_v26, 0.0  ;;  %v916_v31 = vadd.f32 %v1290_v25, %v898_v28  ;;  %v1438_v32 = vpop.f32.mrb[31].mxu0 }
 0x8b6   :  { %v918_v33 = vmul.f32 %v909_v30, %v1735_v29  ;;  %v917_v35 = vmax.f32 %v916_v31, 0.0  ;;  %v1482_v29 = vld [vmem:[%s1936_s12] sm:$0xff]  }
 0x8b8   :  { %v919_v36 = vadd.f32 %v918_v33, %v1687_v3  ;;  %v920_v37 = vmul.f32 %v917_v35, %v1737_v34  ;;  %v1480_v3 = vld [vmem:[%s1934_s10] sm:$0xff]  }
 0x8ba   :  { %v922_v38 = vpack.c.bf16 %v919_v36, %v919_v36  ;;  %v921_v39 = vadd.f32 %v920_v37, %v1696_v7  ;;  %v1481_v7 = vld [vmem:[%s1934_s10 + $0x8] sm:$0xff]  }
 0x8bc   :  { %v924_v40 = vpack.c.bf16 %v921_v39, %v921_v39  ;;  %1448 = vmatmul.mubr.msk.bf16.vlgmr.msra.gmra.mrb[32].mxu0 %vm91_vm2, %v922_v38 }
 0x8bd   :  { %1463 = vmatprep.mubr.msk.bf16.mxu0 %vm1561_vm0, %v1560_v0  ;;  %1460 = vmatpush3.bf16.msra.mxu0 %v1482_v29 }
 0x8be   :  { %1442 = vmatmul.mubr.msk.bf16.vlgmr.msra.gmra.mrb[28].mxu1 %vm91_vm2, %v924_v40  ;;  %1461 = vmatprep.subr.bf16.mxu0 %v1560_v0 }
 0x8bf   :  { %1455 = vmatprep.mubr.msk.bf16.mxu1 %vm1561_vm0, %v1560_v0  ;;  %1452 = vmatpush3.bf16.msra.mxu1 %v1480_v3 }
 0x8c0   :  { %1453 = vmatprep.subr.bf16.mxu1 %v1560_v0 }
 0x8c1   :  { %1462 = vmatpush3.bf16.msra.mxu0 %v1483_v53 }
 0x8c3   :  { %1454 = vmatpush3.bf16.msra.mxu1 %v1481_v7 }
 0x8c4   :  { %1467 = vmatprep.subr.bf16.mxu1 %v1560_v0 }
 0x98f   :  { %v1012_v34 = vpop.f32.mrb[32].mxu0 }
 0x990   :  { %v1449_v41 = vpop.f32.mrb[33].mxu0 }
 0x991   :  { %v966_v42 = vpop.f32.mrb[28].mxu1  ;;  %v1015_v44 = vpop.f32.mrb[34].mxu0 }
 0x992   :  { %v1013_v45 = vadd.f32 %v1012_v34, %v966_v42  ;;  %v1443_v46 = vpop.f32.mrb[29].mxu1  ;;  %v1450_v47 = vpop.f32.mrb[35].mxu0 }
 0x993   :  { %v969_v48 = vpop.f32.mrb[30].mxu1 }
 0x994   :  { %v1025_v49 = vadd.f32 %v1293_v43, %v1013_v45  ;;  %v1444_v50 = vpop.f32.mrb[31].mxu1 }
 0x996   :  { %v1026_v51 = vmax.f32 %v1025_v49, 0.0 }
 0x998   :  { %v1027_v52 = vpack.c.bf16 %v1026_v51, %v1026_v51 }
 0x99a   :  { %1456 = vmatmul.mubr.msk.bf16.vlgmr.msra.gmra.mrb[32].mxu1 %vm1051_vm3, %v1027_v52 }
 0x99b   :  { %1471 = vmatprep.mubr.msk.bf16.mxu1 %vm1561_vm0, %v1560_v0  ;;  %1468 = vmatpush3.bf16.msra.mxu1 %v1484_v54 }
 0x99c   :  { %1469 = vmatprep.subr.bf16.mxu1 %v1560_v0  ;;  %v1298_v0 = vld [vmem:[%s1937_s13] ss:$0 sm:$0xff]  ;;  %s1530_s13 = scalar_lea.vmem %s1239_s14, 128 }
 0x99d   :  { %p1531_p2 = scmp.ne.s32.totalorder %s1239_s14, %s1530_s13  ;;  %p1536_p4 = scmp.lt.s32.totalorder %s1530_s13, %s1530_s13 }
 0x99f   :  { %1470 = vmatpush3.bf16.msra.mxu1 %v1485_v63  ;;  %p1537_p5 = por %p1536_p4, %p1535_p3 }
 0x9a1   :  { %p1538_p6 = pnand %p1537_p5, %p1531_p2 }
 0xa6d   :  { %v1089_v56 = vpop.f32.mrb[32].mxu1 }
 0xa6e   :  { %v1090_v57 = vadd.f32 %v1294_v55, %v1089_v56  ;;  %v1457_v58 = vpop.f32.mrb[33].mxu1 }
 0xa6f   :  { %v1092_v59 = vpop.f32.mrb[34].mxu1 }
 0xa70   :  { %v1095_v60 = vmax.f32 %v1090_v57, 0.0  ;;  %v1458_v61 = vpop.f32.mrb[35].mxu1 }
 0xa72   :  { %v1096_v62 = vpack.c.bf16 %v1095_v60, %v1095_v60 }
 0xa74   :  { %1464 = vmatmul.mubr.msk.bf16.vlgmr.msra.gmra.mrb[36].mxu0 %vm1051_vm3, %v1096_v62 }
 0xb47   :  { %v1157_v1 = vpop.f32.mrb[36].mxu0 }
 0xb48   :  { %v1158_v2 = vadd.f32 %v1298_v0, %v1157_v1  ;;  %v1465_v4 = vpop.f32.mrb[37].mxu0 }
 0xb49   :  { %v1160_v5 = vpop.f32.mrb[38].mxu0 }
 0xb4a   :  { %v1163_v6 = vmax.f32 %v1158_v2, 0.0  ;;  %v1466_v8 = vpop.f32.mrb[39].mxu0 }
 0xb4c   :  { %v1164_v9 = vpack.c.bf16 %v1163_v6, %v1163_v6 }
 0xb4e   :  { %1472 = vmatmul.mubr.msk.bf16.vlgmr.msra.gmra.mrb[36].mxu1 %vm1051_vm3, %v1164_v9 }
 0xc21   :  { %v1225_v12 = vpop.f32.mrb[36].mxu1 }
 0xc22   :  { %v1226_v13 = vadd.f32 %v1302_v11, %v1225_v12  ;;  %v1473_v14 = vpop.f32.mrb[37].mxu1 }
 0xc23   :  { %v1228_v15 = vpop.f32.mrb[38].mxu1 }
 0xc24   :  { %1231 = vst [vmem:[#allocation7] sm:$0xff] %v1226_v13  ;;  %v1474_v16 = vpop.f32.mrb[39].mxu1 }
 0xc25   :  { %1541 = shalt.err (!%p1538_p6)
}
 0xc26   :  { %s1542_s15 = scalar_lea.hbm %s1940_s16, 128 }
 0xc27   :  { %p1543_p7 = scmp.ne.s32.totalorder %s1940_s16, %s1542_s15  ;;  %p1546_p8 = scmp.lt.u32.totalorder %s1542_s15, %s1940_s16 }
 0xc29   :  { %p1548_p9 = pnand %p1546_p8, %p1543_p7 }
 0xc2b   :  { %1551 = shalt.err (!%p1548_p9)
}
 0xc2c   :  { %1241 = dma.vmem_to_hbm [thread:$0]  %s1239_s14, 128, %s1940_s16, [#allocation4]  }
 0xc2d   :  { %1556 = dma.done.wait [#allocation4], 128  }
 0xc2e   :  { %1557 = vsyncadd [#allocation4], 4294967168 }
 0xc2f   :  { %1245 = vsyncpa [#allocation3], 1 }
 0xc30   :  { %1246 = vsyncpa [#allocation6], 1 }
 0xc31   :  { %1247 = vsyncpa [#allocation4], 1 }

</bundles_post_ra>
